<compile_context>
chip_gen: v5e
topology: v5e:2x2
jax: 0.10.0
libtpu: 0.0.40
codegen_flags: <defaults>
</compile_context>

<pallas_src>
import jax
import jax.numpy as jnp
from jax.experimental import pallas as pl
from jax.experimental.pallas import tpu as pltpu


def _round_up(n, m):
    return ((n + m - 1) // m) * m


def _cdiv(a, b):
    return (a + b - 1) // b


def _pad2d(a, rows, cols):
    r, c = a.shape
    if r == rows and c == cols:
        return a
    return jnp.pad(a, ((0, rows - r), (0, cols - c)))


def _vmem_capacity_bytes():
    try:
        return int(pltpu.get_tpu_info().vmem_capacity_bytes)
    except Exception:
        return 64 * 1024 * 1024  # conservative fallback: v7x per-TensorCore VMEM


def _mlp_kernel(x_ref, w1t_ref, w2t_ref, o_ref, acc_ref):
    # Grid = (batch_tiles [parallel], hidden_tiles [arbitrary, reduction]).
    # x_ref  : [tm,      d_in_p]   same block across the hidden axis
    # w1t_ref: [d_in_p,  th    ]   hidden slice of W1^T
    # w2t_ref: [th,      d_out_p]  hidden slice of W2^T
    # o_ref  : [tm,      d_out_p]  written once, on the last hidden step
    # acc_ref: [tm,      d_out_p]  f32 accumulator scratch (resident)
    k = pl.program_id(1)

    @pl.when(k == 0)
    def _init():
        acc_ref[...] = jnp.zeros_like(acc_ref)

    # ReLU is elementwise over the hidden dim, so per-hidden-tile
    # relu -> matmul-accumulate is exact.
    h = jnp.dot(x_ref[...], w1t_ref[...], preferred_element_type=jnp.float32)
    h = jnp.maximum(h, 0.0)
    acc_ref[...] += jnp.dot(h.astype(w2t_ref.dtype), w2t_ref[...],
                            preferred_element_type=jnp.float32)

    @pl.when(k == pl.num_programs(1) - 1)
    def _finalize():
        o_ref[...] = acc_ref[...].astype(o_ref.dtype)


def prepare_mlp_weights(w1, w2, *, compute_dtype=None, target_hidden_tile=512):
    """Transpose + pad the weights ONCE (weights are static in inference).

    w1: [hidden, in]  w2: [out, hidden]  (PyTorch nn.Linear layout)
    compute_dtype: e.g. jnp.bfloat16 for the fast MXU path on v6e/v7x
                   (f32 accumulation is kept inside the kernel).
    """
    d_hid, d_in = w1.shape
    d_out, d_hid2 = w2.shape
    assert d_hid2 == d_hid, "w1/w2 hidden dims mismatch"

    is_bf16 = (compute_dtype is not None
               and jnp.dtype(compute_dtype) == jnp.dtype(jnp.bfloat16))
    lane = 256 if is_bf16 else 128           # 256-wide MXU tiles for bf16 (v6e/v7x)

    d_in_p = _round_up(d_in, lane)
    d_out_p = _round_up(d_out, lane)

    # Hidden tile: ~target_hidden_tile, lane-aligned, exactly dividing d_hid_p
    # without padding d_hid to a huge round number.
    n_h = max(1, _cdiv(d_hid, max(target_hidden_tile, lane)))
    th = _round_up(_cdiv(d_hid, n_h), lane)
    d_hid_p = n_h * th

    w1t = _pad2d(w1.T, d_in_p, d_hid_p)      # transpose once, outside the kernel
    w2t = _pad2d(w2.T, d_hid_p, d_out_p)
    if compute_dtype is not None:
        w1t = w1t.astype(compute_dtype)
        w2t = w2t.astype(compute_dtype)

    return dict(w1t=w1t, w2t=w2t,
                d_in=d_in, d_hid=d_hid, d_out=d_out,
                d_in_p=d_in_p, d_hid_p=d_hid_p, d_out_p=d_out_p,
                tile_hid=th, compute_dtype=compute_dtype)


def mlp_apply(x, prepared, *, block_m=None):
    """Fused relu(x @ W1^T) @ W2^T using pre-transposed/padded weights."""
    B, d_in = x.shape
    assert d_in == prepared["d_in"], "input dim mismatch"

    w1t, w2t = prepared["w1t"], prepared["w2t"]
    d_in_p = prepared["d_in_p"]
    d_hid_p = prepared["d_hid_p"]
    d_out_p = prepared["d_out_p"]
    th = prepared["tile_hid"]
    d_out = prepared["d_out"]
    cdt = prepared["compute_dtype"]
    out_dtype = x.dtype

    phys = _vmem_capacity_bytes()
    budget = max(phys - (8 << 20), 16 << 20)          # physical VMEM - headroom
    if block_m is None:
        block_m = 512 if phys >= (100 << 20) else 256  # v5e/v6e vs v7x

    # >= 2 batch tiles (when B allows) so both v7x TensorCores get work, and
    # pad the ragged batch only to the chosen tile (not all the way to block_m).
    n_bt = max(_cdiv(B, block_m), 2 if B > 8 else 1)
    tm = min(block_m, _round_up(_cdiv(B, n_bt), 8))

    comp_dtype = cdt if cdt is not None else x.dtype
    item = jnp.dtype(comp_dtype).itemsize
    out_item = jnp.dtype(out_dtype).itemsize

    def vmem_bytes(tm_):
        return (2 * tm_ * d_in_p * item              # x tile (double-buffered)
                + 2 * d_in_p * th * item             # W1^T tile (double-buffered)
                + 2 * th * d_out_p * item            # W2^T tile (double-buffered)
                + 2 * tm_ * d_out_p * out_item       # out tile (double-buffered)
                + 4 * tm_ * d_out_p                  # f32 accumulator scratch
                + 4 * tm_ * th)                      # f32 hidden intermediate

    # Shrink the batch tile until the per-step VMEM plan fits the chip.
    while vmem_bytes(tm) > budget and tm > 8:
        tm = max(8, _round_up(tm // 2, 8))

    b_p = _round_up(B, tm)
    n_bt = b_p // tm
    n_h = d_hid_p // th

    x_p = _pad2d(x, b_p, d_in_p)
    if cdt is not None:
        x_p = x_p.astype(cdt)

    cost = pl.CostEstimate(
        flops=2 * b_p * d_in_p * d_hid_p + 2 * b_p * d_hid_p * d_out_p,
        transcendentals=0,
        bytes_accessed=item * (b_p * d_in_p + d_in_p * d_hid_p + d_hid_p * d_out_p)
        + out_item * b_p * d_out_p,
    )

    vmem_limit = int(min(max(int(1.5 * vmem_bytes(tm)), 32 << 20), budget))

    out_p = pl.pallas_call(
        _mlp_kernel,
        out_shape=jax.ShapeDtypeStruct((b_p, d_out_p), out_dtype),
        grid=(n_bt, n_h),
        in_specs=[
            pl.BlockSpec((tm, d_in_p), lambda i, k: (i, 0)),
            pl.BlockSpec((d_in_p, th), lambda i, k: (0, k)),
            pl.BlockSpec((th, d_out_p), lambda i, k: (k, 0)),
        ],
        out_specs=pl.BlockSpec((tm, d_out_p), lambda i, k: (i, 0)),
        scratch_shapes=[pltpu.VMEM((tm, d_out_p), jnp.float32)],
        compiler_params=pltpu.CompilerParams(
            dimension_semantics=("parallel", "arbitrary"),
            vmem_limit_bytes=vmem_limit,
        ),
        cost_estimate=cost,
    )(x_p, w1t, w2t)

    return out_p[:B, :d_out]


def mlp_forward(x, w1, w2, *, compute_dtype=None, block_m=None):
    """Convenience one-shot path (prepares weights on every call)."""
    prepared = prepare_mlp_weights(w1, w2, compute_dtype=compute_dtype)
    return mlp_apply(x, prepared, block_m=block_m)


def mlp_reference(x, w1, w2):
    return jnp.maximum(x @ w1.T, 0.0) @ w2.T


if __name__ == "__main__":
    key = jax.random.PRNGKey(0)

    def init_linear(k, out_f, in_f):
        bound = 1.0 / jnp.sqrt(float(in_f))
        return jax.random.uniform(k, (out_f, in_f), jnp.float32,
                                  minval=-bound, maxval=bound)

    kx, k1, k2, kx2, k3, k4 = jax.random.split(key, 6)

    # ---- test 1: small shapes matching the module (single grid step) -------
    batch, input_dim, hidden_dim, output_dim = 8, 32, 64, 16
    x = jax.random.normal(kx, (batch, input_dim), dtype=jnp.float32)
    w1 = init_linear(k1, hidden_dim, input_dim)
    w2 = init_linear(k2, output_dim, hidden_dim)

    out = jax.block_until_ready(mlp_forward(x, w1, w2))
    ref = mlp_reference(x, w1, w2)
    assert out.shape == (batch, output_dim)
    assert jnp.allclose(out, ref, atol=1e-5, rtol=1e-5), "mismatch vs reference (small)"

    # ---- test 2: ragged batch + multi-tile hidden reduction ----------------
    # Exercises the accumulator / pl.when path, the >=2-batch-tile split and
    # the prepare-once weight path.
    batch2, in2, hid2, out2 = 300, 192, 1536, 96
    x2 = jax.random.normal(kx2, (batch2, in2), dtype=jnp.float32)
    w1b = init_linear(k3, hid2, in2)
    w2b = init_linear(k4, out2, hid2)

    prepared = prepare_mlp_weights(w1b, w2b)          # transpose/pad weights ONCE
    out2_v = jax.block_until_ready(mlp_apply(x2, prepared))
    ref2 = mlp_reference(x2, w1b, w2b)
    assert out2_v.shape == (batch2, out2)
    assert jnp.allclose(out2_v, ref2, atol=1e-4, rtol=1e-4), "mismatch vs reference (tiled)"

    print("KERNEL_OK")
</pallas_src>

<mosaic_0001>
module attributes {stable_mosaic.version = 11 : i64} {
  func.func @_mlp_kernel(%arg0: i32, %arg1: i32, %arg2: memref<8x128xf32, #tpu.memory_space<vmem>>, %arg3: memref<128x128xf32, #tpu.memory_space<vmem>>, %arg4: memref<128x128xf32, #tpu.memory_space<vmem>>, %arg5: memref<8x128xf32, #tpu.memory_space<vmem>>, %arg6: memref<8x128xf32, #tpu.memory_space<vmem>>) attributes {dimension_semantics = [#tpu.dimension_semantics<parallel>, #tpu.dimension_semantics<arbitrary>], iteration_bounds = array<i64: 1, 1>, scalar_prefetch = 0 : i64, scratch_operands = 1 : i64, tpu.core_type = #tpu.core_type<tc>, window_params = [{transform_indices = @transform_0, window_bounds = array<i64: 8, 128>}, {transform_indices = @transform_1, window_bounds = array<i64: 128, 128>}, {transform_indices = @transform_2, window_bounds = array<i64: 128, 128>}, {transform_indices = @transform_3, window_bounds = array<i64: 8, 128>}]} {
    %c0_i32 = arith.constant 0 : i32
    %0 = arith.cmpi eq, %arg1, %c0_i32 : i32
    %1 = arith.extui %0 : i1 to i32
    %c0_i32_0 = arith.constant 0 : i32
    %2 = arith.cmpi ne, %1, %c0_i32_0 : i32
    scf.if %2 {
      %cst_14 = arith.constant 0.000000e+00 : f32
      %16 = vector.broadcast %cst_14 : f32 to vector<8x128xf32>
      %c0_15 = arith.constant 0 : index
      %c0_16 = arith.constant 0 : index
      %17 = vector.load %arg6[%c0_15, %c0_16] : memref<8x128xf32, #tpu.memory_space<vmem>>, vector<8x128xf32>
      tpu.vector_store %arg6[%c0_15, %c0_16], %16 {strides = array<i32>} : memref<8x128xf32, #tpu.memory_space<vmem>>, vector<8x128xf32>,
    } else {
    }
    %c0 = arith.constant 0 : index
    %c0_1 = arith.constant 0 : index
    %3 = vector.load %arg2[%c0, %c0_1] : memref<8x128xf32, #tpu.memory_space<vmem>>, vector<8x128xf32>
    %c0_2 = arith.constant 0 : index
    %c0_3 = arith.constant 0 : index
    %4 = vector.load %arg3[%c0_2, %c0_3] : memref<128x128xf32, #tpu.memory_space<vmem>>, vector<128x128xf32>
    %cst = arith.constant dense<0.000000e+00> : vector<8x128xf32>
    %5 = tpu.matmul %3, %4, %cst {dimension_numbers = #tpu.dot_dimension_numbers<[1], [0], [0], [1], [0, 0, 1, 1], [], []>} : vector<8x128xf32>, vector<128x128xf32>, vector<8x128xf32> -> vector<8x128xf32>
    %cst_4 = arith.constant 0.000000e+00 : f32
    %6 = vector.broadcast %cst_4 : f32 to vector<8x128xf32>
    %7 = arith.maximumf %5, %6 : vector<8x128xf32>
    %c0_5 = arith.constant 0 : index
    %c0_6 = arith.constant 0 : index
    %8 = vector.load %arg6[%c0_5, %c0_6] : memref<8x128xf32, #tpu.memory_space<vmem>>, vector<8x128xf32>
    %c0_7 = arith.constant 0 : index
    %c0_8 = arith.constant 0 : index
    %9 = vector.load %arg4[%c0_7, %c0_8] : memref<128x128xf32, #tpu.memory_space<vmem>>, vector<128x128xf32>
    %cst_9 = arith.constant dense<0.000000e+00> : vector<8x128xf32>
    %10 = tpu.matmul %7, %9, %cst_9 {dimension_numbers = #tpu.dot_dimension_numbers<[1], [0], [0], [1], [0, 0, 1, 1], [], []>} : vector<8x128xf32>, vector<128x128xf32>, vector<8x128xf32> -> vector<8x128xf32>
    %11 = arith.addf %8, %10 : vector<8x128xf32>
    %c0_10 = arith.constant 0 : index
    %c0_11 = arith.constant 0 : index
    %12 = vector.load %arg6[%c0_10, %c0_11] : memref<8x128xf32, #tpu.memory_space<vmem>>, vector<8x128xf32>
    tpu.vector_store %arg6[%c0_10, %c0_11], %11 {strides = array<i32>} : memref<8x128xf32, #tpu.memory_space<vmem>>, vector<8x128xf32>,
    %c0_i32_12 = arith.constant 0 : i32
    %13 = arith.cmpi eq, %arg1, %c0_i32_12 : i32
    %14 = arith.extui %13 : i1 to i32
    %c0_i32_13 = arith.constant 0 : i32
    %15 = arith.cmpi ne, %14, %c0_i32_13 : i32
    scf.if %15 {
      %c0_14 = arith.constant 0 : index
      %c0_15 = arith.constant 0 : index
      %16 = vector.load %arg6[%c0_14, %c0_15] : memref<8x128xf32, #tpu.memory_space<vmem>>, vector<8x128xf32>
      %c0_16 = arith.constant 0 : index
      %c0_17 = arith.constant 0 : index
      %17 = vector.load %arg5[%c0_16, %c0_17] : memref<8x128xf32, #tpu.memory_space<vmem>>, vector<8x128xf32>
      tpu.vector_store %arg5[%c0_16, %c0_17], %16 {strides = array<i32>} : memref<8x128xf32, #tpu.memory_space<vmem>>, vector<8x128xf32>,
    } else {
    }
    return
  }
  func.func @transform_0(%arg0: i32, %arg1: i32) -> (i32, i32) {
    %c0_i32 = arith.constant 0 : i32
    %c0_i32_0 = arith.constant 0 : i32
    return %arg0, %c0_i32 : i32, i32
  }
  func.func @transform_1(%arg0: i32, %arg1: i32) -> (i32, i32) {
    %c0_i32 = arith.constant 0 : i32
    %c0_i32_0 = arith.constant 0 : i32
    return %c0_i32, %arg1 : i32, i32
  }
  func.func @transform_2(%arg0: i32, %arg1: i32) -> (i32, i32) {
    %c0_i32 = arith.constant 0 : i32
    %c0_i32_0 = arith.constant 0 : i32
    return %arg1, %c0_i32 : i32, i32
  }
  func.func @transform_3(%arg0: i32, %arg1: i32) -> (i32, i32) {
    %c0_i32 = arith.constant 0 : i32
    %c0_i32_0 = arith.constant 0 : i32
    return %arg0, %c0_i32 : i32, i32
  }
}

</mosaic_0001>

<bundles_post_ra>
// kernel: tpu_custom_call.1
= control target key start
LH: loop header
LB: loop body
LE: loop exit
PB: predicated region body
PF: predicated region fallthrough
CT: control target
= control target key end

     0   :  { %8 = vsyncpa [#allocation4], 0  ;;  %s311_s0 = inlined_call_operand.hbm [shape: f32[8,128], index: 0, kind: input, shape index: {}]   ;;  %s312_s1 = inlined_call_operand.hbm [shape: f32[128,128], index: 1, kind: input, shape index: {}]   ;;  %s313_s2 = inlined_call_operand.hbm [shape: f32[128,128], index: 2, kind: input, shape index: {}]   ;;  %s314_s3 = inlined_call_operand.hbm [shape: f32[8,128], index: 3, kind: output, shape index: {}]  }
   0x1   :  { %9 = vsyncpa [#allocation7], 0  ;;  %s26_s14 = sshll.u32 %s312_s1, 4  ;;  %s27_s14 = int_to_ptr.hbm [resolvable:$true] %s26_s14 }
   0x2   :  { %10 = vsyncpa [#allocation5], 0  ;;  %s273_s15 = smov [#allocation6]   ;;  %s16_s19 = sshll.u32 %s311_s0, 4  ;;  %s17_s19 = int_to_ptr.hbm [resolvable:$true] %s16_s19 }
   0x3   :  { %s28_s16 = sshll.u32 %s273_s15, 4  ;;  %s274_s20 = smov 128   ;;  %s29_s16 = int_to_ptr.vmem [resolvable:$true] %s28_s16 }
   0x4   :  { %s275_s21 = smov 8   ;;  %s276_s22 = smov [#allocation3]  }
   0x5   :  { %34 = dma.hbm_to_vmem [thread:$0]  %s27_s14, 2048, %s29_s16, [#allocation7], %s274_s20, %s274_s20, %s275_s21  }
   0x6   :  { %s18_s23 = sshll.u32 %s276_s22, 4  ;;  %s39_s26 = sshll.u32 %s313_s2, 4  ;;  %s19_s23 = int_to_ptr.vmem [resolvable:$true] %s18_s23  ;;  %s40_s26 = int_to_ptr.hbm [resolvable:$true] %s39_s26 }
   0x7   :  { %21 = dma.hbm_to_vmem [thread:$0]  %s17_s19, 128, %s19_s23, [#allocation4]  }
   0x8   :  { %s277_s1 = smov [#allocation8]  }
   0x9   :  { %s41_s27 = sshll.u32 %s277_s1, 4  ;;  %s42_s27 = int_to_ptr.vmem [resolvable:$true] %s41_s27 }
   0xa   :  { %47 = dma.hbm_to_vmem [thread:$0]  %s40_s26, 2048, %s42_s27, [#allocation7], %s274_s20, %s274_s20, %s275_s21  }
   0xb   :  { %267 = dma.done.wait [#allocation4], 128  }
   0xc   :  { %268 = vsyncadd [#allocation4], 4294967168 }
   0xd   :  { %269 = dma.done.wait [#allocation7], 4096  }
   0xe   :  { %270 = vsyncadd [#allocation7], 4294963200  ;;  %v81_v0 = vld [vmem:[#allocation6 + $0x78] sm:$0xff]  ;;  %v80_v1 = vld [vmem:[#allocation6 + $0x70] sm:$0xff]  ;;  %s278_s0 = smov [#allocation9]   ;;  %s154_s30 = sshll.u32 %s314_s3, 4  ;;  %s155_s30 = int_to_ptr.hbm [resolvable:$true] %s154_s30 }
   0xf   :  { %82 = vmatpush.msra.mxu0 %v81_v0  ;;  %v79_v2 = vld [vmem:[#allocation6 + $0x68] sm:$0xff]  ;;  %v78_v3 = vld [vmem:[#allocation6 + $0x60] sm:$0xff]  ;;  %v119_v4 = vld [vmem:[#allocation8 + $0x78] sm:$0xff]  ;;  %s152_s2 = sshll.u32 %s278_s0, 4  ;;  %s153_s2 = int_to_ptr.vmem [resolvable:$true] %s152_s2 }
  0x10   :  { %v77_v5 = vld [vmem:[#allocation6 + $0x58] sm:$0xff]  ;;  %120 = vmatpush.msra.mxu1 %v119_v4  ;;  %v118_v6 = vld [vmem:[#allocation8 + $0x70] sm:$0xff]  ;;  %v117_v7 = vld [vmem:[#allocation8 + $0x68] sm:$0xff] }
  0x11   :  { %83 = vmatpush.msra.mxu0 %v80_v1  ;;  %v76_v8 = vld [vmem:[#allocation6 + $0x50] sm:$0xff]  ;;  %v116_v9 = vld [vmem:[#allocation8 + $0x60] sm:$0xff]  ;;  %v75_v10 = vld [vmem:[#allocation6 + $0x48] sm:$0xff] }
  0x12   :  { %121 = vmatpush.msra.mxu1 %v118_v6  ;;  %v115_v11 = vld [vmem:[#allocation8 + $0x58] sm:$0xff]  ;;  %v74_v12 = vld [vmem:[#allocation6 + $0x40] sm:$0xff]  ;;  %v114_v13 = vld [vmem:[#allocation8 + $0x50] sm:$0xff] }
  0x13   :  { %84 = vmatpush.msra.mxu0 %v79_v2  ;;  %v73_v14 = vld [vmem:[#allocation6 + $0x38] sm:$0xff]  ;;  %v113_v15 = vld [vmem:[#allocation8 + $0x48] sm:$0xff]  ;;  %v72_v16 = vld [vmem:[#allocation6 + $0x30] sm:$0xff] }
  0x14   :  { %122 = vmatpush.msra.mxu1 %v117_v7  ;;  %v112_v17 = vld [vmem:[#allocation8 + $0x40] sm:$0xff]  ;;  %v71_v18 = vld [vmem:[#allocation6 + $0x28] sm:$0xff]  ;;  %v111_v19 = vld [vmem:[#allocation8 + $0x38] sm:$0xff] }
  0x15   :  { %85 = vmatpush.msra.mxu0 %v78_v3  ;;  %v70_v20 = vld [vmem:[#allocation6 + $0x20] sm:$0xff]  ;;  %v110_v21 = vld [vmem:[#allocation8 + $0x30] sm:$0xff]  ;;  %v69_v22 = vld [vmem:[#allocation6 + $0x18] sm:$0xff] }
  0x16   :  { %123 = vmatpush.msra.mxu1 %v116_v9  ;;  %v109_v23 = vld [vmem:[#allocation8 + $0x28] sm:$0xff]  ;;  %v68_v24 = vld [vmem:[#allocation6 + $0x10] sm:$0xff]  ;;  %v108_v25 = vld [vmem:[#allocation8 + $0x20] sm:$0xff] }
  0x17   :  { %86 = vmatpush.msra.mxu0 %v77_v5  ;;  %v67_v26 = vld [vmem:[#allocation6 + $0x8] sm:$0xff]  ;;  %v107_v27 = vld [vmem:[#allocation8 + $0x18] sm:$0xff]  ;;  %v66_v28 = vld [vmem:[#allocation6] sm:$0xff] }
  0x18   :  { %124 = vmatpush.msra.mxu1 %v115_v11  ;;  %v65_v29 = vld [vmem:[#allocation3] sm:$0xff]  ;;  %v106_v30 = vld [vmem:[#allocation8 + $0x10] sm:$0xff]  ;;  %v105_v31 = vld [vmem:[#allocation8 + $0x8] sm:$0xff] }
  0x19   :  { %87 = vmatpush.msra.mxu0 %v76_v8  ;;  %v104_v32 = vld [vmem:[#allocation8] sm:$0xff] }
  0x1a   :  { %125 = vmatpush.msra.mxu1 %v114_v13 }
  0x1b   :  { %88 = vmatpush.msra.mxu0 %v75_v10 }
  0x1c   :  { %126 = vmatpush.msra.mxu1 %v113_v15 }
  0x1d   :  { %89 = vmatpush.msra.mxu0 %v74_v12 }
  0x1e   :  { %127 = vmatpush.msra.mxu1 %v112_v17 }
  0x1f   :  { %90 = vmatpush.msra.mxu0 %v73_v14 }
  0x20   :  { %128 = vmatpush.msra.mxu1 %v111_v19 }
  0x21   :  { %91 = vmatpush.msra.mxu0 %v72_v16 }
  0x22   :  { %129 = vmatpush.msra.mxu1 %v110_v21 }
  0x23   :  { %92 = vmatpush.msra.mxu0 %v71_v18 }
  0x24   :  { %130 = vmatpush.msra.mxu1 %v109_v23 }
  0x25   :  { %93 = vmatpush.msra.mxu0 %v70_v20 }
  0x26   :  { %131 = vmatpush.msra.mxu1 %v108_v25 }
  0x27   :  { %94 = vmatpush.msra.mxu0 %v69_v22 }
  0x28   :  { %132 = vmatpush.msra.mxu1 %v107_v27 }
  0x29   :  { %95 = vmatpush.msra.mxu0 %v68_v24 }
  0x2a   :  { %133 = vmatpush.msra.mxu1 %v106_v30 }
  0x2b   :  { %96 = vmatpush.msra.mxu0 %v67_v26 }
  0x2c   :  { %134 = vmatpush.msra.mxu1 %v105_v31 }
  0x2d   :  { %97 = vmatpush.msra.mxu0 %v66_v28 }
  0x2e   :  { %98 = vmatmul.f32.vlgmr.msra.gmra.mxu0 %v65_v29  ;;  %135 = vmatpush.msra.mxu1 %v104_v32 }
  0xab   :  { %v99_v33 = vpop.f32.mrf.mxu0 }
  0xac   :  { %v102_v34 = vmax.f32 %v99_v33, 0.0 }
  0xae   :  { %136 = vmatmul.f32.vlgmr.msra.gmra.mxu1 %v102_v34 }
 0x12b   :  { %v137_v35 = vpop.f32.mrf.mxu1 }
 0x12c   :  { %146 = vst [vmem:[#allocation9] sm:$0xff] %v137_v35 }
 0x12d   :  { %157 = dma.vmem_to_hbm [thread:$0]  %s153_s2, 128, %s155_s30, [#allocation5]  }
 0x12e   :  { %271 = dma.done.wait [#allocation5], 128  }
 0x12f   :  { %272 = vsyncadd [#allocation5], 4294967168 }
 0x130   :  { %162 = vsyncpa [#allocation4], 1 }
 0x131   :  { %163 = vsyncpa [#allocation7], 1 }
 0x132   :  { %164 = vsyncpa [#allocation5], 1 }

</bundles_post_ra>
